<compile_context>
chip_gen: v7x
topology: tpu7x:2x2x1
jax: 0.10.0
libtpu: 0.0.40
codegen_flags: <defaults>
</compile_context>

<pallas_src>
import functools

import jax
import jax.numpy as jnp
from jax.experimental import pallas as pl
from jax.experimental.pallas import tpu as pltpu


# ---------------------------------------------------------------------------
# Kernel bodies
# ---------------------------------------------------------------------------

def _mlp_attention(gap, params_ref, C, Cr):
    """Tiny squeeze-excite MLP: (C,1) f32 GAP -> (C,1) f32 sigmoid attention.

    params_ref layout (f32, shape (C+1, 2*Cr+1)):
      [0:C , 0:Cr    ] = conv1 weight transposed (in C, out Cr)
      [0:C , Cr:2Cr  ] = conv2 weight (out C, in Cr)
      [0:C , 2Cr:2Cr+1] = conv2 bias  (C, 1)
      [C:C+1, 0:Cr   ] = conv1 bias  (1, Cr)
    """
    w1t = params_ref[0:C, 0:Cr]                    # (C, Cr)
    w2 = params_ref[0:C, Cr:2 * Cr]                # (C, Cr)
    b2 = params_ref[0:C, 2 * Cr:2 * Cr + 1]        # (C, 1)
    b1 = params_ref[C:C + 1, 0:Cr]                 # (1, Cr)

    # conv1 (1x1, C -> Cr) + ReLU, computed in the natural (C, .) orientation.
    h = jnp.sum(w1t * gap, axis=0, keepdims=True) + b1       # (1, Cr)
    h = jnp.maximum(h, 0.0)
    # conv2 (1x1, Cr -> C) + sigmoid.
    a = jnp.sum(w2 * h, axis=1, keepdims=True) + b2          # (C, 1)
    return jax.nn.sigmoid(a)


def _attn_kernel(y_ref, params_ref, attn_ref, acc_ref, *, inv_hw):
    """Phase 1: GAP over HW tiles (accumulated in f32 scratch) + tiny MLP."""
    t = pl.program_id(1)

    @pl.when(t == 0)
    def _init():
        acc_ref[...] = jnp.zeros_like(acc_ref)

    # Widening cast fused into the reduction; y tile never materialized as f32.
    acc_ref[...] += jnp.sum(y_ref[...], axis=-1, keepdims=True,
                            dtype=jnp.float32)

    @pl.when(t == pl.num_programs(1) - 1)
    def _finalize():
        C = y_ref.shape[0]
        Cr = (params_ref.shape[1] - 1) // 2
        gap = acc_ref[...] * inv_hw                           # (C, 1) f32
        attn_ref[...] = _mlp_attention(gap, params_ref, C, Cr)


def _scale_kernel(x_ref, attn_ref, o_ref):
    """Phase 2: lane-dense scale of a (C, T) tile by a per-channel attention."""
    o_ref[...] = x_ref[...] * attn_ref[...].astype(x_ref.dtype)


def _fused_kernel(xy_ref, params_ref, o_ref, *, inv_hw):
    """Dedup fast path (x is y): GAP + MLP + scale in one pass over the slab."""
    C = xy_ref.shape[0]
    Cr = (params_ref.shape[1] - 1) // 2
    x = xy_ref[...]
    gap = jnp.sum(x, axis=-1, keepdims=True, dtype=jnp.float32) * inv_hw
    a = _mlp_attention(gap, params_ref, C, Cr)
    o_ref[...] = x * a.astype(x.dtype)


# ---------------------------------------------------------------------------
# Wrapper
# ---------------------------------------------------------------------------

def _pack_params(w1, b1, w2, b2):
    """Pack the four tiny conv params into one f32 slab (one DMA, one VMEM tile)."""
    Cr, C = w1.shape
    w1t = jnp.transpose(w1).astype(jnp.float32)               # (C, Cr)
    w2f = w2.astype(jnp.float32)                               # (C, Cr)
    b2c = b2.reshape(C, 1).astype(jnp.float32)                 # (C, 1)
    top = jnp.concatenate([w1t, w2f, b2c], axis=1)             # (C, 2Cr+1)
    bot = jnp.zeros((1, 2 * Cr + 1), jnp.float32)
    bot = bot.at[0, :Cr].set(b1.astype(jnp.float32))
    return jnp.concatenate([top, bot], axis=0)                 # (C+1, 2Cr+1)


def _pick_hw_tile(HW, C, itemsize, max_lanes=2048, max_block_bytes=4 << 20):
    """Largest multiple-of-128 divisor of HW (<= max_lanes) within a VMEM budget."""
    best = None
    t = 128
    while t <= min(max_lanes, HW):
        if HW % t == 0 and C * t * itemsize <= max_block_bytes:
            best = t
        t += 128
    return best if best is not None else HW


def ca_layer(x, y, w1, b1, w2, b2, *, hw_tile_lanes=2048):
    """CALayer forward: out = x * sigmoid(conv2(relu(conv1(avgpool(y))))).

    x, y : (B, C, H, W)
    w1   : (Cr, C)  conv1 weight (PyTorch OIHW with the 1x1 squeezed away)
    b1   : (Cr,)
    w2   : (C, Cr)  conv2 weight
    b2   : (C,)
    """
    B, C, H, W = x.shape
    Cr = w1.shape[0]
    HW = H * W
    itemsize = x.dtype.itemsize

    params = _pack_params(w1, b1, w2, b2)          # (C+1, 2Cr+1) f32
    PR, PC = params.shape

    # Flatten spatial dims -> lane-dense last axis (contiguous, free reshape).
    x2 = x.reshape(B, C, HW)

    slab_bytes = C * HW * itemsize
    dedup = x is y            # true CALayer usage: out = x * CA(x)

    if dedup and slab_bytes <= (3 << 20):
        # ---- single-pass fused path: stream the slab from HBM exactly once ----
        cost = pl.CostEstimate(
            flops=int(B * (2 * C * HW + 4 * C * Cr)),
            transcendentals=int(B * C),
            bytes_accessed=int(2 * B * C * HW * itemsize),
        )
        out = pl.pallas_call(
            functools.partial(_fused_kernel, inv_hw=1.0 / HW),
            out_shape=jax.ShapeDtypeStruct((B, C, HW), x.dtype),
            grid_spec=pltpu.PrefetchScalarGridSpec(
                num_scalar_prefetch=0,
                grid=(B,),
                in_specs=[
                    pl.BlockSpec((pl.Squeezed(), C, HW), lambda b: (b, 0, 0)),
                    pl.BlockSpec((PR, PC), lambda b: (0, 0)),
                ],
                out_specs=pl.BlockSpec((pl.Squeezed(), C, HW),
                                       lambda b: (b, 0, 0)),
            ),
            compiler_params=pltpu.CompilerParams(
                dimension_semantics=("parallel",),
                # double-buffered in + out blocks + packed params + headroom
                vmem_limit_bytes=int(min(5 * slab_bytes + (2 << 20), 32 << 20)),
            ),
            cost_estimate=cost,
        )(x2, params)
        return out.reshape(B, C, H, W)

    # ---- two-phase HW-tiled path (scales to large slabs, many pipeline steps) ----
    y2 = y.reshape(B, C, HW)
    T = _pick_hw_tile(HW, C, itemsize, max_lanes=hw_tile_lanes)
    n_t = HW // T

    # Phase 1: attention vector per (batch, channel).
    attn_cost = pl.CostEstimate(
        flops=int(B * (C * HW + 4 * C * Cr)),
        transcendentals=int(B * C),
        bytes_accessed=int(B * C * HW * itemsize + B * C * 4 + PR * PC * 4),
    )
    attn = pl.pallas_call(
        functools.partial(_attn_kernel, inv_hw=1.0 / HW),
        out_shape=jax.ShapeDtypeStruct((B, C, 1), jnp.float32),
        grid_spec=pltpu.PrefetchScalarGridSpec(
            num_scalar_prefetch=0,
            grid=(B, n_t),
            in_specs=[
                pl.BlockSpec((pl.Squeezed(), C, T), lambda b, t: (b, 0, t)),
                pl.BlockSpec((PR, PC), lambda b, t: (0, 0)),
            ],
            out_specs=pl.BlockSpec((pl.Squeezed(), C, 1), lambda b, t: (b, 0, 0)),
            scratch_shapes=[pltpu.VMEM((C, 1), jnp.float32)],
        ),
        compiler_params=pltpu.CompilerParams(
            dimension_semantics=("parallel", "arbitrary")),
        cost_estimate=attn_cost,
    )(y2, params)

    # Phase 2: scale-only streaming kernel; both grid axes parallel (megacore).
    scale_cost = pl.CostEstimate(
        flops=int(B * C * HW),
        transcendentals=0,
        bytes_accessed=int(2 * B * C * HW * itemsize + B * C * 4),
    )
    out = pl.pallas_call(
        _scale_kernel,
        out_shape=jax.ShapeDtypeStruct((B, C, HW), x.dtype),
        grid_spec=pltpu.PrefetchScalarGridSpec(
            num_scalar_prefetch=0,
            grid=(B, n_t),
            in_specs=[
                pl.BlockSpec((pl.Squeezed(), C, T), lambda b, t: (b, 0, t)),
                pl.BlockSpec((pl.Squeezed(), C, 1), lambda b, t: (b, 0, 0)),
            ],
            out_specs=pl.BlockSpec((pl.Squeezed(), C, T), lambda b, t: (b, 0, t)),
        ),
        compiler_params=pltpu.CompilerParams(
            dimension_semantics=("parallel", "parallel")),
        cost_estimate=scale_cost,
    )(x2, attn)
    return out.reshape(B, C, H, W)


# ---------------------------------------------------------------------------
# Pure-JAX reference + demo
# ---------------------------------------------------------------------------

def reference(x, y, w1, b1, w2, b2):
    """Pure-JAX reference matching the PyTorch forward exactly."""
    gap = jnp.mean(y, axis=(2, 3), keepdims=True)                       # (B,C,1,1)
    h = jnp.einsum('oc,bcij->boij', w1, gap) + b1[None, :, None, None]
    h = jax.nn.relu(h)
    a = jnp.einsum('oc,bcij->boij', w2, h) + b2[None, :, None, None]
    a = jax.nn.sigmoid(a)
    return x * a


if __name__ == "__main__":
    key = jax.random.PRNGKey(0)
    kx, ky, kw1, kb1, kw2, kb2 = jax.random.split(key, 6)

    # channel must be divisible by reduction=8
    B, C, H, W = 2, 32, 16, 16
    reduction = 8
    Cr = C // reduction

    x = jax.random.normal(kx, (B, C, H, W), dtype=jnp.float32)
    y = jax.random.normal(ky, (B, C, H, W), dtype=jnp.float32)

    # Deterministic 1x1-conv weight/bias init (kaiming-uniform-like bound
    # = 1/sqrt(fan_in); fan_in = in_channels for a 1x1 conv).
    bound1 = 1.0 / (C ** 0.5)
    w1 = jax.random.uniform(kw1, (Cr, C), minval=-bound1, maxval=bound1,
                            dtype=jnp.float32)
    b1 = jax.random.uniform(kb1, (Cr,), minval=-bound1, maxval=bound1,
                            dtype=jnp.float32)
    bound2 = 1.0 / (Cr ** 0.5)
    w2 = jax.random.uniform(kw2, (C, Cr), minval=-bound2, maxval=bound2,
                            dtype=jnp.float32)
    b2 = jax.random.uniform(kb2, (C,), minval=-bound2, maxval=bound2,
                            dtype=jnp.float32)

    ref_xy = jax.block_until_ready(reference(x, y, w1, b1, w2, b2))
    ref_yy = jax.block_until_ready(reference(y, y, w1, b1, w2, b2))

    # 1) Two-phase tiled path, single HW tile per batch element.
    out1 = jax.block_until_ready(ca_layer(x, y, w1, b1, w2, b2))
    assert out1.shape == (B, C, H, W)
    assert jnp.allclose(out1, ref_xy, atol=1e-5, rtol=1e-5), "tiled path mismatch"

    # 2) Two-phase tiled path with multiple HW tiles (exercises GAP accumulator).
    out2 = jax.block_until_ready(
        ca_layer(x, y, w1, b1, w2, b2, hw_tile_lanes=128))
    assert jnp.allclose(out2, ref_xy, atol=1e-5, rtol=1e-5), "multi-tile mismatch"

    # 3) Dedup fused fast path (x is y — the actual CALayer usage pattern).
    out3 = jax.block_until_ready(ca_layer(y, y, w1, b1, w2, b2))
    assert jnp.allclose(out3, ref_yy, atol=1e-5, rtol=1e-5), "fused path mismatch"

    print("KERNEL_OK")
</pallas_src>

<mosaic_0001>
module attributes {stable_mosaic.version = 11 : i64} {
  func.func @_attn_kernel(%arg0: i32, %arg1: i32, %arg2: memref<1x32x256xf32, #tpu.memory_space<vmem>>, %arg3: memref<33x9xf32, #tpu.memory_space<vmem>>, %arg4: memref<1x32x1xf32, #tpu.memory_space<vmem>>, %arg5: memref<32x1xf32, #tpu.memory_space<vmem>>) attributes {dimension_semantics = [#tpu.dimension_semantics<parallel>, #tpu.dimension_semantics<arbitrary>], iteration_bounds = array<i64: 2, 1>, scalar_prefetch = 0 : i64, scratch_operands = 1 : i64, tpu.core_type = #tpu.core_type<tc>, window_params = [{transform_indices = @transform_0, window_bounds = array<i64: 1, 32, 256>}, {pipeline_mode = #tpu.pipeline_mode<synchronous>, transform_indices = @transform_1, window_bounds = array<i64: 33, 9>}, {transform_indices = @transform_2, window_bounds = array<i64: 1, 32, 1>}]} {
    %c0_i32 = arith.constant 0 : i32
    %0 = arith.cmpi eq, %arg1, %c0_i32 : i32
    %1 = arith.extui %0 : i1 to i32
    %c0_i32_0 = arith.constant 0 : i32
    %2 = arith.cmpi ne, %1, %c0_i32_0 : i32
    scf.if %2 {
      %cst_9 = arith.constant 0.000000e+00 : f32
      %13 = vector.broadcast %cst_9 : f32 to vector<32x1xf32>
      %c0_10 = arith.constant 0 : index
      %c0_11 = arith.constant 0 : index
      %14 = vector.load %arg5[%c0_10, %c0_11] : memref<32x1xf32, #tpu.memory_space<vmem>>, vector<32x1xf32>
      tpu.vector_store %arg5[%c0_10, %c0_11], %13 {strides = array<i32>} : memref<32x1xf32, #tpu.memory_space<vmem>>, vector<32x1xf32>,
    } else {
    }
    %c0 = arith.constant 0 : index
    %c0_1 = arith.constant 0 : index
    %3 = vector.load %arg5[%c0, %c0_1] : memref<32x1xf32, #tpu.memory_space<vmem>>, vector<32x1xf32>
    %c0_2 = arith.constant 0 : index
    %c0_3 = arith.constant 0 : index
    %c0_4 = arith.constant 0 : index
    %4 = vector.load %arg2[%c0_2, %c0_3, %c0_4] : memref<1x32x256xf32, #tpu.memory_space<vmem>>, vector<1x32x256xf32>
    %5 = vector.shape_cast %4 : vector<1x32x256xf32> to vector<32x256xf32>
    %cst = arith.constant dense<0.000000e+00> : vector<32xf32>
    %6 = vector.multi_reduction <add>, %5, %cst [1] : vector<32x256xf32> to vector<32xf32>
    %7 = vector.shape_cast %6 : vector<32xf32> to vector<32x1xf32>
    %8 = arith.addf %3, %7 : vector<32x1xf32>
    %c0_5 = arith.constant 0 : index
    %c0_6 = arith.constant 0 : index
    %9 = vector.load %arg5[%c0_5, %c0_6] : memref<32x1xf32, #tpu.memory_space<vmem>>, vector<32x1xf32>
    tpu.vector_store %arg5[%c0_5, %c0_6], %8 {strides = array<i32>} : memref<32x1xf32, #tpu.memory_space<vmem>>, vector<32x1xf32>,
    %c0_i32_7 = arith.constant 0 : i32
    %10 = arith.cmpi eq, %arg1, %c0_i32_7 : i32
    %11 = arith.extui %10 : i1 to i32
    %c0_i32_8 = arith.constant 0 : i32
    %12 = arith.cmpi ne, %11, %c0_i32_8 : i32
    scf.if %12 {
      %c0_9 = arith.constant 0 : index
      %c0_10 = arith.constant 0 : index
      %13 = vector.load %arg5[%c0_9, %c0_10] : memref<32x1xf32, #tpu.memory_space<vmem>>, vector<32x1xf32>
      %cst_11 = arith.constant 3.906250e-03 : f32
      %14 = vector.broadcast %cst_11 : f32 to vector<32x1xf32>
      %15 = arith.mulf %13, %14 : vector<32x1xf32>
      %c0_12 = arith.constant 0 : index
      %c0_13 = arith.constant 0 : index
      %16 = vector.load %arg3[%c0_12, %c0_13] : memref<33x9xf32, #tpu.memory_space<vmem>>, vector<32x4xf32>
      %c0_14 = arith.constant 0 : index
      %c4 = arith.constant 4 : index
      %17 = vector.load %arg3[%c0_14, %c4] : memref<33x9xf32, #tpu.memory_space<vmem>>, vector<32x4xf32>
      %c0_15 = arith.constant 0 : index
      %c8 = arith.constant 8 : index
      %18 = vector.load %arg3[%c0_15, %c8] : memref<33x9xf32, #tpu.memory_space<vmem>>, vector<32x1xf32>
      %c32 = arith.constant 32 : index
      %c0_16 = arith.constant 0 : index
      %19 = vector.load %arg3[%c32, %c0_16] : memref<33x9xf32, #tpu.memory_space<vmem>>, vector<1x4xf32>
      %20 = vector.broadcast %15 : vector<32x1xf32> to vector<32x4xf32>
      %21 = arith.mulf %16, %20 : vector<32x4xf32>
      %cst_17 = arith.constant dense<0.000000e+00> : vector<4xf32>
      %22 = vector.multi_reduction <add>, %21, %cst_17 [0] : vector<32x4xf32> to vector<4xf32>
      %23 = vector.shape_cast %22 : vector<4xf32> to vector<1x4xf32>
      %24 = arith.addf %23, %19 : vector<1x4xf32>
      %cst_18 = arith.constant 0.000000e+00 : f32
      %25 = vector.broadcast %cst_18 : f32 to vector<1x4xf32>
      %26 = arith.maximumf %24, %25 : vector<1x4xf32>
      %27 = vector.broadcast %26 : vector<1x4xf32> to vector<32x4xf32>
      %28 = arith.mulf %17, %27 : vector<32x4xf32>
      %cst_19 = arith.constant dense<0.000000e+00> : vector<32xf32>
      %29 = vector.multi_reduction <add>, %28, %cst_19 [1] : vector<32x4xf32> to vector<32xf32>
      %30 = vector.shape_cast %29 : vector<32xf32> to vector<32x1xf32>
      %31 = arith.addf %30, %18 : vector<32x1xf32>
      %32 = arith.negf %31 : vector<32x1xf32>
      %33 = math.exp %32 : vector<32x1xf32>
      %cst_20 = arith.constant 1.000000e+00 : f32
      %34 = vector.broadcast %cst_20 : f32 to vector<32x1xf32>
      %35 = arith.addf %34, %33 : vector<32x1xf32>
      %36 = arith.divf %34, %35 : vector<32x1xf32>
      %c0_21 = arith.constant 0 : index
      %c0_22 = arith.constant 0 : index
      %c0_23 = arith.constant 0 : index
      %37 = vector.load %arg4[%c0_21, %c0_22, %c0_23] : memref<1x32x1xf32, #tpu.memory_space<vmem>>, vector<1x32x1xf32>
      %38 = vector.shape_cast %37 : vector<1x32x1xf32> to vector<32x1xf32>
      %39 = vector.shape_cast %36 : vector<32x1xf32> to vector<1x32x1xf32>
      tpu.vector_store %arg4[%c0_21, %c0_22, %c0_23], %39 {strides = array<i32>} : memref<1x32x1xf32, #tpu.memory_space<vmem>>, vector<1x32x1xf32>,
    } else {
    }
    return
  }
  func.func @transform_0(%arg0: i32, %arg1: i32) -> (i32, i32, i32) {
    %c0_i32 = arith.constant 0 : i32
    %c0_i32_0 = arith.constant 0 : i32
    return %arg0, %c0_i32, %arg1 : i32, i32, i32
  }
  func.func @transform_1(%arg0: i32, %arg1: i32) -> (i32, i32) {
    %c0_i32 = arith.constant 0 : i32
    %c0_i32_0 = arith.constant 0 : i32
    %c0_i32_1 = arith.constant 0 : i32
    return %c0_i32, %c0_i32_0 : i32, i32
  }
  func.func @transform_2(%arg0: i32, %arg1: i32) -> (i32, i32, i32) {
    %c0_i32 = arith.constant 0 : i32
    %c0_i32_0 = arith.constant 0 : i32
    %c0_i32_1 = arith.constant 0 : i32
    return %arg0, %c0_i32, %c0_i32_0 : i32, i32, i32
  }
}

</mosaic_0001>

<bundles_post_ra>
// kernel: tpu_custom_call.1
= control target key start
LH: loop header
LB: loop body
LE: loop exit
PB: predicated region body
PF: predicated region fallthrough
CT: control target
= control target key end

     0   :  { %7 = vsyncpa [#allocation4], 0  ;;  %s808_s0 = inlined_call_operand.hbm [shape: f32[2,32,256], index: 0, kind: input, shape index: {}]   ;;  %s809_s1 = inlined_call_operand.vmem [shape: f32[33,9], index: 1, kind: input, shape index: {}]   ;;  %s810_s2 = inlined_call_operand.vmem [shape: f32[2,32,1], index: 2, kind: output, shape index: {}]  }
   0x1   :  { %9 = vsyncpa [#allocation4 + $0x1], 0  ;;  %s649_s9 = smov 0   ;;  %s651_s10 = smov 0  }
   0x2   :  { %s653_s11 = smov 0   ;;  %s655_s12 = smov 0  }
   0x3   :  { %s657_s13 = smov 0   ;;  %s659_s14 = smov 0  }
   0x4 LB: > { %s445_s15 = sadd.s32 4294967295, %s624_s14   ;;  %s27_s16 = sadd.s32 1, %s620_s13  ;;  %s624_s14 = sphi %s659_s14, %s15_s14   ;;  %s620_s13 = sphi %s657_s13, %s818_s13   ;;  %s616_s12 = sphi %s655_s12, %s817_s12   ;;  %s612_s11 = sphi %s653_s11, %s816_s11   ;;  %s608_s10 = sphi %s651_s10, %s815_s10   ;;  %s604_s9 = sphi %s649_s9, %s814_s9  }
   0x5   : > { %p29_p0 = scmp.ge.s32.totalorder %s27_s16, 2  ;;  %s36_s17 = sadd.s32 1, %s612_s11 }
   0x6   : > { %p43_p1 = scmp.ne.s32.totalorder %s612_s11, %s608_s10  ;;  %p44_p2 = scmp.eq.s32.totalorder %s624_s14, 0 }
   0x7   : > { %s820_s16 = smov (%p29_p0, %s27_s16), 0  ;;  %p49_p4 = scmp.ne.s32.totalorder %s608_s10, %s604_s9 }
   0x8   : > { %p685_p3 = por %p44_p2, %p43_p1  ;;  %s31_s19 = ssub.s32 %s620_s13, %s820_s16 }
   0x9   : > { %p50_p5 = scmp.eq.s32.totalorder %s445_s15, 0  ;;  %p34_p6 = scmp.eq.s32.totalorder %s31_s19, 0 }
   0xa   : > { %p470_p8 = scmp.lt.s32.totalorder %s624_s14, 2  ;;  %s123_s22 = sand.u32 1, %s612_s11  }
   0xb   : > { %p692_p7 = por %p50_p5, %p49_p4  ;;  %s462_s23 = sshll.u32 %s620_s13, 10 }
   0xc   : > { %s698_s21 = scalar_select %p34_p6, %s612_s11, %s36_s17  }
   0xd   : > { %s449_s24 = sshll.u32 %s123_s22, 6  ;;  %s705_s27 = scalar_lea.hbm %s808_s0, %s462_s23 }
   0xe   : > { %s127_s28 = scalar_lea.vmem [#allocation3], %s449_s24  ;;  %p709_p9 = pnand %p470_p8, %p685_p3 }
   0xf   : > { %s136_s29 = sshll.u32 %s127_s28, 4  ;;  %s715_s3 = scalar_lea.sflag [#allocation4], %s123_s22  ;;  %s713_s29 = int_to_ptr.vmem [resolvable:$true] %s136_s29 }
  0x10   : > { %s544_s4 = scalar_lea.hbm %s705_s27, 1024  ;;  %p546_p11 = pneg %p709_p9 }
  0x11   : > { %p545_p10 = scmp.ne.s32.totalorder %s705_s27, %s544_s4  ;;  %s549_s7 = scalar_lea.hbm %s808_s0, 2048 }
  0x12   : > { %p550_p0 = scmp.lt.u32.totalorder %s705_s27, %s808_s0  ;;  %p551_p1 = scmp.lt.u32.totalorder %s549_s7, %s544_s4 }
  0x13   : > { %p547_p12 = pnand %p546_p11, %p545_p10  ;;  %p553_p3 = scmp.lt.u32.totalorder %s544_s4, %s705_s27 }
  0x14   : > { %p552_p2 = por %p551_p1, %p550_p0 }
  0x15   : > { %p548_p13 = pneg %p547_p12 }
  0x16   : > { %p554_p4 = por %p553_p3, %p552_p2 }
  0x18   : > { %p555_p5 = pnand %p554_p4, %p548_p13 }
  0x1a   : > { %558 = shalt.err (!%p555_p5)
}
  0x1b   : > { %s559_s15 = scalar_lea.vmem %s713_s29, 1024  ;;  %s626_s17 = smov [#allocation3]  }
  0x1c   : > { %p560_p6 = scmp.ne.s32.totalorder %s713_s29, %s559_s15  ;;  %s564_s18 = sshll.u32 %s626_s17, 4  ;;  %s565_s18 = int_to_ptr.vmem [resolvable:$false] %s564_s18 }
  0x1d   : > { %s566_s19 = scalar_lea.vmem %s565_s18, 2048  ;;  %p567_p12 = scmp.lt.s32.totalorder %s713_s29, %s565_s18 }
  0x1e   : > { %p562_p8 = pnand %p560_p6, %p546_p11  ;;  %p568_p0 = scmp.lt.s32.totalorder %s566_s19, %s559_s15 }
  0x20   : > { %p563_p10 = pneg %p562_p8  ;;  %p569_p1 = por %p568_p0, %p567_p12 }
  0x22   : > { %p570_p2 = pnand %p569_p1, %p563_p10 }
  0x24   : > { %573 = shalt.err (!%p570_p2)
}
  0x25   : > { %s627_s22 = smov 256   ;;  %s628_s23 = smov 16  }
  0x26   : > { %469 = dma.hbm_to_vmem [thread:$0]  (!%p709_p9), %s705_s27, 1024, %s713_s29, %s715_s3, %s627_s22, %s627_s22, %s628_s23  }
  0x27   : > { %p452_p11 = scmp.ge.s32.totalorder %s624_s14, 1  ;;  %p144_p13 = scmp.lt.s32.totalorder %s624_s14, 3 }
  0x29   : > { %p145_p3 = pnand %p452_p11, %p144_p13 }
  0x2a   : > { %s150_s24 = sand.u32 (!%p145_p3), 1, %s608_s10  }
  0x2b   : > { %148 = sbr.rel (%p145_p3) target bundleno = 902 (0x386), region = 28  ;;  %s453_s25 = sshll.u32 (!%p145_p3), %s150_s24, 6 }
  0x2c   : > { %s151_s26 = scalar_lea.sflag (!%p145_p3), [#allocation4], %s150_s24  ;;  %s154_s28 = scalar_lea.vmem (!%p145_p3), [#allocation3], %s453_s25 }
  0x32   : > { %599 = dma.done.wait (%p692_p7), %s151_s26, 1024  }
  0x33   : > { %601 = vsyncadd (%p692_p7), %s151_s26, 4294966272  ;;  %vm185_vm0 = vcmask 7168   ;;  %v629_v0 = vmov 0.0   ;;  %v194_v1 = vld [vmem:[%s154_s28] sm:$0xff]  ;;  %v195_v2 = vld [vmem:[%s154_s28 + $0x8] sm:$0xff]  ;;  %v630_v13 = vmov 0   ;;  %v279_v56 = vlaneseq }
  0x34   : > { %186 = vst.msk [vmem:[#allocation2] sm:$0xff] %vm185_vm0, %v629_v0  ;;  %187 = vst.msk [vmem:[#allocation2 + $0x8] sm:$0xff] %vm185_vm0, %v629_v0  ;;  %v196_v3 = vld [vmem:[%s154_s28 + $0x10] sm:$0xff]  ;;  %v202_v4 = vadd.f32 %v195_v2, %v194_v1  ;;  %v197_v5 = vld [vmem:[%s154_s28 + $0x18] sm:$0xff]  ;;  %526 = vset.pattern.permute.xlu0 %v630_v13  ;;  %527 = vset.pattern.permute.xlu1 %v630_v13  ;;  %vm263_vm1 = vcmask 31744   ;;  %s631_s9 = smov 4  }
  0x35   : > { %188 = vst.msk [vmem:[#allocation2 + $0x10] sm:$0xff] %vm185_vm0, %v629_v0  ;;  %189 = vst.msk [vmem:[#allocation2 + $0x18] sm:$0xff] %vm185_vm0, %v629_v0  ;;  %v198_v6 = vld [vmem:[%s154_s28 + $0x20] sm:$0xff]  ;;  %v199_v7 = vld [vmem:[%s154_s28 + $0x28] sm:$0xff]  ;;  %v205_v11 = vadd.f32 %v197_v5, %v196_v3  ;;  %v280_v59 = vshrl.u32 %v279_v56, 7  ;;  %s632_s15 = smov 124  }
  0x36   : > { %v208_v8 = vadd.f32 %v199_v7, %v198_v6  ;;  %v200_v9 = vld [vmem:[%s154_s28 + $0x30] sm:$0xff]  ;;  %v201_v10 = vld [vmem:[%s154_s28 + $0x38] sm:$0xff]  ;;  %203 = vadd.xlane.f32.xlu0 %v202_v4  ;;  %v235_v34 = vld [vmem:[%s809_s1 + $0x8] sm:$0xff]  ;;  %s633_s17 = smov 120   ;;  %p176_p7 = scmp.lt.s32.totalorder %s616_s12, 1 }
  0x37   : > { %v211_v12 = vadd.f32 %v201_v10, %v200_v9  ;;  %v234_v35 = vld [vmem:[%s809_s1] sm:$0xff]  ;;  %v236_v39 = vld [vmem:[%s809_s1 + $0x10] sm:$0xff]  ;;  %v237_v44 = vld [vmem:[%s809_s1 + $0x18] sm:$0xff]  ;;  %v281_v63 = vsub.s32 0, %v280_v59 }
  0x38   : > { %209 = vadd.xlane.f32.xlu1 %v208_v8  ;;  %v238_v60 = vld [vmem:[%s809_s1 + $0x20] sm:$0x1]  ;;  %s822_s12 = smov (!%p176_p7, %s616_s12), 1 }
  0x39   : > { %s463_s18 = sshll.u32 %s822_s12, 5 }
  0x3a   : > { %206 = vadd.xlane.f32.xlu0 %v205_v11  ;;  %s180_s23 = scalar_lea.vmem %s810_s2, %s463_s18 }
  0x3b   : > { %v190_v14 = vld [vmem:[#allocation2] sm:$0xff]  ;;  %v191_v19 = vld [vmem:[#allocation2 + $0x8] sm:$0xff] }
  0x3c   : > { %212 = vadd.xlane.f32.xlu1 %v211_v12  ;;  %v192_v15 = vld [vmem:[#allocation2 + $0x10] sm:$0xff]  ;;  %v193_v21 = vld [vmem:[#allocation2 + $0x18] sm:$0xff] }
  0xc3   : > { %v204_v16 = vpop.xlane.xlu0 %203 }
  0xc4   : > { %v214_v17 = vadd.f32 %v204_v16, %v190_v14 }
  0xc5   : > { %v210_v18 = vpop.xlane.xlu1 %209 }
  0xc6   : > { %v216_v20 = vadd.f32 %v210_v18, %v192_v15  ;;  %219 = vst.msk [vmem:[#allocation2] sm:$0xff] %vm185_vm0, %v214_v17 }
  0xc7   : > { %v207_v22 = vpop.xlane.xlu0 %206 }
  0xc8   : > { %221 = vst.msk [vmem:[#allocation2 + $0x10] sm:$0xff] %vm185_vm0, %v216_v20  ;;  %v215_v23 = vadd.f32 %v207_v22, %v191_v19 }
  0xc9   : > { %v213_v24 = vpop.xlane.xlu1 %212 }
  0xca   : > { %v217_v25 = vadd.f32 %v213_v24, %v193_v21  ;;  %220 = vst.msk [vmem:[#allocation2 + $0x8] sm:$0xff] %vm185_vm0, %v215_v23 }
  0xcc   : > { %222 = vst.msk [vmem:[#allocation2 + $0x18] sm:$0xff] %vm185_vm0, %v217_v25 }
  0xcd   : > { %v226_v26 = vld [vmem:[#allocation2] sm:$0xff] }
  0xce   : > { %v230_v27 = vmul.f32 0.00390625, %v226_v26 }
  0xcf   : > { %v228_v29 = vld [vmem:[#allocation2 + $0x10] sm:$0xff] }
  0xd0   : > { %241 = vperm.xlu0 %526, %v230_v27   ;;  %v232_v31 = vmul.f32 0.00390625, %v228_v29 }
  0xd1   : > { %v227_v28 = vld [vmem:[#allocation2 + $0x8] sm:$0xff] }
  0xd2   : > { %v231_v30 = vmul.f32 0.00390625, %v227_v28 }
  0xd3   : > { %v229_v32 = vld [vmem:[#allocation2 + $0x18] sm:$0xff] }
  0xd4   : > { %246 = vperm.xlu1 %527, %v231_v30   ;;  %v233_v33 = vmul.f32 0.00390625, %v229_v32 }
  0xd8   : > { %251 = vperm.xlu1 %527, %v232_v31  }
  0xdc   : > { %256 = vperm.xlu1 %527, %v233_v33  }
 0x14f   : > { %v242_v36 = vpop.permute.xlu0 %241 }
 0x150   : > { %v259_v40 = vmul.f32 %v242_v36, %v234_v35 }
 0x152   : > { %v264_v45 = vsel %vm263_vm1, %v259_v40, 0.0 }
 0x153   : > { %v247_v37 = vpop.permute.xlu1 %246 }
 0x154   : > { %v260_v38 = vmul.f32 %v247_v37, %v235_v34 }
 0x156   : > { %v265_v42 = vsel %vm263_vm1, %v260_v38, 0.0 }
 0x157   : > { %v252_v41 = vpop.permute.xlu1 %251  ;;  %v266_v47 = vadd.f32 %v265_v42, %v264_v45 }
 0x158   : > { %v261_v43 = vmul.f32 %v252_v41, %v236_v39 }
 0x15a   : > { %v267_v46 = vsel %vm263_vm1, %v261_v43, 0.0 }
 0x15b   : > { %v257_v48 = vpop.permute.xlu1 %256  ;;  %v268_v50 = vadd.f32 %v267_v46, %v266_v47 }
 0x15c   : > { %v262_v49 = vmul.f32 %v257_v48, %v237_v44 }
 0x15e   : > { %v269_v51 = vsel %vm263_vm1, %v262_v49, 0.0 }
 0x15f   : > { %v270_v52 = vadd.f32 %v269_v51, %v268_v50 }
 0x161   : > { %v271_v53 = vrot.slane %v270_v52, 4 }
 0x163   : > { %v272_v54 = vadd.f32 %v271_v53, %v270_v52 }
 0x165   : > { %v273_v55 = vrot.slane %v272_v54, 2 }
 0x167   : > { %v274_v57 = vadd.f32 %v273_v55, %v272_v54 }
 0x169   : > { %v275_v58 = vrot.slane %v274_v57, 1 }
 0x16b   : > { %v276_v61 = vadd.f32 %v275_v58, %v274_v57 }
 0x16d   : > { %v277_v62 = vadd.f32 %v276_v61, %v238_v60 }
 0x16f   : > { %v278_v0 = vmax.f32 %v277_v62, 0.0 }
 0x171   : > { %v282_v1 = vrot.slane %v278_v0, %v281_v63 }
 0x173   : > { %284 = vrot.lane.b32.xlu1 %v282_v1, %s631_s9 }
 0x1e5   : > { %v285_v2 = vpop.permute.xlu1 %284 }
 0x1e6   : > { %v287_v3 = vmul.f32 %v285_v2, %v234_v35  ;;  %v288_v4 = vmul.f32 %v285_v2, %v235_v34  ;;  %v289_v5 = vmul.f32 %v285_v2, %v236_v39  ;;  %v290_v6 = vmul.f32 %v285_v2, %v237_v44 }
 0x1e8   : > { %295 = vrot.lane.b32.xlu1 %v287_v3, %s632_s15 }
 0x1ec   : > { %297 = vrot.lane.b32.xlu1 %v288_v4, %s632_s15 }
 0x1f0   : > { %299 = vrot.lane.b32.xlu1 %v289_v5, %s632_s15 }
 0x1f4   : > { %301 = vrot.lane.b32.xlu1 %v290_v6, %s632_s15 }
 0x25a   : > { %v296_v7 = vpop.permute.xlu1 %295 }
 0x25b   : > { %v307_v8 = vsel %vm263_vm1, %v296_v7, 0.0 }
 0x25c   : > { %308 = vadd.xlane.f32.xlu0 %v307_v8 }
 0x25e   : > { %v298_v9 = vpop.permute.xlu1 %297 }
 0x25f   : > { %v310_v10 = vsel %vm263_vm1, %v298_v9, 0.0 }
 0x260   : > { %311 = vadd.xlane.f32.xlu1 %v310_v10 }
 0x262   : > { %v300_v11 = vpop.permute.xlu1 %299 }
 0x263   : > { %v313_v12 = vsel %vm263_vm1, %v300_v11, 0.0 }
 0x264   : > { %314 = vadd.xlane.f32.xlu0 %v313_v12 }
 0x266   : > { %v302_v13 = vpop.permute.xlu1 %301 }
 0x267   : > { %v316_v14 = vsel %vm263_vm1, %v302_v13, 0.0 }
 0x268   : > { %317 = vadd.xlane.f32.xlu0 %v316_v14 }
 0x2e9   : > { %v309_v15 = vpop.xlane.xlu0 %308 }
 0x2ea   : > { %v319_v16 = vadd.f32 %v309_v15, %v234_v35 }
 0x2ec   : > { %v456_v17 = vmul.f32 -1.442695, %v319_v16 }
 0x2ed   : > { %v312_v18 = vpop.xlane.xlu1 %311 }
 0x2ee   : > { %528 = vpow2.f32 %v456_v17  ;;  %v320_v19 = vadd.f32 %v312_v18, %v235_v34 }
 0x2f0   : > { %v457_v20 = vmul.f32 -1.442695, %v320_v19 }
 0x2f1   : > { %v315_v21 = vpop.xlane.xlu0 %314 }
 0x2f2   : > { %530 = vpow2.f32 %v457_v20  ;;  %v321_v22 = vadd.f32 %v315_v21, %v236_v39 }
 0x2f4   : > { %v458_v23 = vmul.f32 -1.442695, %v321_v22 }
 0x2f5   : > { %v318_v24 = vpop.xlane.xlu0 %317 }
 0x2f6   : > { %532 = vpow2.f32 %v458_v23  ;;  %v322_v25 = vadd.f32 %v318_v24, %v237_v44 }
 0x2f8   : > { %v529_v26 = vpop.eup %528  ;;  %v459_v27 = vmul.f32 -1.442695, %v322_v25 }
 0x2f9   : > { %v335_v28 = vadd.f32 1.0, %v529_v26 }
 0x2fa   : > { %534 = vpow2.f32 %v459_v27 }
 0x2fb   : > { %536 = vrcp.f32 %v335_v28 }
 0x2fc   : > { %v531_v29 = vpop.eup %530 }
 0x2fd   : > { %v336_v30 = vadd.f32 1.0, %v531_v29 }
 0x2ff   : > { %538 = vrcp.f32 %v336_v30 }
 0x300   : > { %v533_v31 = vpop.eup %532 }
 0x301   : > { %v337_v32 = vadd.f32 1.0, %v533_v31 }
 0x303   : > { %540 = vrcp.f32 %v337_v32 }
 0x304   : > { %v535_v33 = vpop.eup %534 }
 0x305   : > { %v537_v34 = vpop.eup %536  ;;  %v338_v35 = vadd.f32 1.0, %v535_v33 }
 0x306   : > { %351 = vrot.lane.b32.xlu1 %v537_v34, %s633_s17 }
 0x307   : > { %542 = vrcp.f32 %v338_v35 }
 0x309   : > { %v539_v36 = vpop.eup %538 }
 0x30a   : > { %353 = vrot.lane.b32.xlu0 %v539_v36, %s633_s17 }
 0x30d   : > { %v541_v37 = vpop.eup %540 }
 0x30e   : > { %355 = vrot.lane.b32.xlu1 %v541_v37, %s633_s17 }
 0x311   : > { %v543_v38 = vpop.eup %542 }
 0x312   : > { %357 = vrot.lane.b32.xlu1 %v543_v38, %s633_s17 }
 0x378   : > { %v352_v39 = vpop.permute.xlu1 %351 }
 0x379   : > { %363 = vst.msk [vmem:[%s180_s23] sm:$0xff] %vm185_vm0, %v352_v39 }
 0x37c   : > { %v354_v40 = vpop.permute.xlu0 %353 }
 0x37d   : > { %364 = vst.msk [vmem:[%s180_s23 + $0x8] sm:$0xff] %vm185_vm0, %v354_v40 }
 0x380   : > { %v356_v41 = vpop.permute.xlu1 %355 }
 0x381   : > { %365 = vst.msk [vmem:[%s180_s23 + $0x10] sm:$0xff] %vm185_vm0, %v356_v41 }
 0x384   : > { %v358_v42 = vpop.permute.xlu1 %357 }
 0x385   : > { %366 = vst.msk [vmem:[%s180_s23 + $0x18] sm:$0xff] %vm185_vm0, %v358_v42 }
 0x386 PF: > { %s15_s14 = sadd.s32 1, %s624_s14   ;;  %s814_s9 = smov %s608_s10 }
 0x387   : > { %p12_p9 = scmp.ge.s32.totalorder %s15_s14, 4   ;;  %s815_s10 = smov %s612_s11 }
 0x388   : > { %s816_s11 = smov %s698_s21  ;;  %s817_s12 = smov %s620_s13 }
 0x389   : > { %s818_s13 = smov %s820_s16  ;;  %14 = sbr.rel (!%p12_p9) target bundleno = 4 (0x4), region = 76 }
 0x390   :  { %388 = vsyncpa [#allocation4], 1 }
 0x391   :  { %390 = vsyncpa [#allocation4 + $0x1], 1 }

</bundles_post_ra>
